<compile_context>
chip_gen: v6e
topology: v6e:2x2x1
jax: 0.10.0
libtpu: 0.0.40
codegen_flags: <defaults>
</compile_context>

<pallas_src>
import functools

import jax
import jax.numpy as jnp
from jax.experimental import pallas as pl
from jax.experimental.pallas import tpu as pltpu

LN_EPS = 1e-5  # torch.nn.LayerNorm default eps

TM_MAX = 256   # dst-node tile (sublane dim of A / rows of output)
TK_MAX = 512   # src-node tile (lane dim of A / reduction axis)


def _round_up(x, m):
    return ((x + m - 1) // m) * m


def _pad2(x, rows, cols):
    return jnp.pad(x, ((0, rows - x.shape[0]), (0, cols - x.shape[1])))


# -----------------------------------------------------------------------------
# Pallas kernels
# -----------------------------------------------------------------------------
def _film_kernel(feat_ref, adj_ref, wcat_ref, lng_ref, lnb_ref, *rest,
                 out_pad, true_out, fuse_predict):
    """One FiLM layer, tiled over (batch, dst tiles, src tiles).

    feat_ref : (TK, in_pad)      f32   src-node features for this src tile
    adj_ref  : (TM, TK)          bf16  dense block adjacency tile (dst x src)
    wcat_ref : (in_pad, 3*out_pad) f32 [W | film_gamma | film_beta], padded
    lng_ref, lnb_ref : (1, out_pad)    LayerNorm affine (zero on padded lanes)
    [pw_ref, pb_ref] : predict head (only when fuse_predict)
    out_ref  : (TM, out_pad) or (TM, pred_pad)
    acc_ref  : (TM, out_pad) f32 VMEM accumulator, resident across src tiles
    """
    if fuse_predict:
        pw_ref, pb_ref, out_ref, acc_ref = rest
    else:
        out_ref, acc_ref = rest

    k = pl.program_id(2)

    @pl.when(k == 0)
    def _():
        acc_ref[...] = jnp.zeros_like(acc_ref)

    # --- FiLM message construction (single fused MXU matmul) -----------------
    feat = feat_ref[...]                                    # (TK, in_pad)
    fused = jnp.dot(feat, wcat_ref[...],
                    preferred_element_type=jnp.float32)     # (TK, 3*out_pad)
    m = fused[:, :out_pad]
    gamma = fused[:, out_pad:2 * out_pad]
    beta = fused[:, 2 * out_pad:]
    msg = jnp.maximum(gamma * m + beta, 0.0)                # relu_
    # Padded lanes/rows of msg are exactly zero (zero-padded weights/features).

    # --- block_compute: sum of incoming messages per destination node --------
    # bf16 x bf16 matmul with f32 accumulation for full MXU throughput.
    acc_ref[...] += jnp.dot(adj_ref[...], msg.astype(jnp.bfloat16),
                            preferred_element_type=jnp.float32)

    # --- finalize: LayerNorm (+ optional predict head) on the last src tile --
    @pl.when(k == pl.num_programs(2) - 1)
    def _():
        h = acc_ref[...]                                    # (TM, out_pad)
        # Padded lanes of h are zero, so sums over all lanes equal sums over
        # the true out_size lanes; divide by the TRUE feature count.
        inv_n = 1.0 / true_out
        mu = jnp.sum(h, axis=-1, keepdims=True) * inv_n
        ex2 = jnp.sum(h * h, axis=-1, keepdims=True) * inv_n
        var = jnp.maximum(ex2 - mu * mu, 0.0)               # single-pass variance
        h_norm = (h - mu) * jax.lax.rsqrt(var + LN_EPS)
        # ln_gamma/ln_beta are zero on padded lanes -> padded output lanes = 0.
        y = h_norm * lng_ref[...] + lnb_ref[...]
        # TODO(synk): training-mode dropout (random mask + 1/(1-p) scaling)
        # omitted; forward is reproduced in eval mode.
        if fuse_predict:
            z = jnp.dot(y, pw_ref[...],
                        preferred_element_type=jnp.float32) + pb_ref[...]
            out_ref[...] = jax.nn.sigmoid(z)
        else:
            out_ref[...] = y


def _predict_kernel(x_ref, w_ref, b_ref, out_ref):
    """Standalone Linear(hidden -> out, bias) + sigmoid (used when num_layers == 1)."""
    z = jnp.dot(x_ref[...], w_ref[...],
                preferred_element_type=jnp.float32) + b_ref[...]
    out_ref[...] = jax.nn.sigmoid(z)


# -----------------------------------------------------------------------------
# Host-side wrappers (padding + pallas_call plumbing)
# -----------------------------------------------------------------------------
def _prep_layer_weights(layer_params, in_pad, out_pad):
    w = layer_params["W"]          # (out, in)   — PyTorch layout
    film = layer_params["film"]    # (2*out, in)
    out_size = w.shape[0]
    w_t = _pad2(w.T, in_pad, out_pad)                       # (in_pad, out_pad)
    g_t = _pad2(film[:out_size].T, in_pad, out_pad)
    b_t = _pad2(film[out_size:].T, in_pad, out_pad)
    wcat = jnp.concatenate([w_t, g_t, b_t], axis=1)         # (in_pad, 3*out_pad)
    lng = _pad2(layer_params["ln_gamma"].reshape(1, -1), 1, out_pad)
    lnb = _pad2(layer_params["ln_beta"].reshape(1, -1), 1, out_pad)
    return wcat, lng, lnb


def film_layer_batched(feats, adjs, layer_params, *, fuse_predict=False,
                       predict_w=None, predict_b=None):
    """feats: (B, N_src, in), adjs: (B, N_dst, N_src).

    Returns padded output (B, N_dst_pad, out_pad) — or (B, N_dst_pad, pred_pad)
    when fuse_predict — caller slices to true shapes."""
    B, n_src, in_size = feats.shape
    _, n_dst, _ = adjs.shape
    out_size = layer_params["W"].shape[0]

    in_pad = _round_up(in_size, 128)
    out_pad = _round_up(out_size, 128)

    tk = min(TK_MAX, _round_up(n_src, 128))
    n_src_pad = _round_up(n_src, tk)
    tm = min(TM_MAX, _round_up(n_dst, 8))
    n_dst_pad = _round_up(n_dst, tm)

    feats_p = jnp.pad(
        feats, ((0, 0), (0, n_src_pad - n_src), (0, in_pad - in_size))
    ).astype(jnp.float32)
    # 0/1 adjacency is exact in bf16; halves HBM traffic and doubles MXU rate.
    adjs_p = jnp.pad(
        adjs, ((0, 0), (0, n_dst_pad - n_dst), (0, n_src_pad - n_src))
    ).astype(jnp.bfloat16)

    wcat, lng, lnb = _prep_layer_weights(layer_params, in_pad, out_pad)

    in_specs = [
        pl.BlockSpec((None, tk, in_pad), lambda b, i, k: (b, k, 0)),   # feat
        pl.BlockSpec((None, tm, tk), lambda b, i, k: (b, i, k)),       # adjacency
        pl.BlockSpec((in_pad, 3 * out_pad), lambda b, i, k: (0, 0)),   # W|film
        pl.BlockSpec((1, out_pad), lambda b, i, k: (0, 0)),            # ln gamma
        pl.BlockSpec((1, out_pad), lambda b, i, k: (0, 0)),            # ln beta
    ]
    args = [feats_p, adjs_p, wcat, lng, lnb]

    if fuse_predict:
        pred_out = predict_w.shape[0]
        pred_pad = _round_up(pred_out, 128)
        pw = _pad2(predict_w.T, out_pad, pred_pad)       # (out_pad, pred_pad)
        pb = _pad2(predict_b.reshape(1, -1), 1, pred_pad)
        in_specs += [
            pl.BlockSpec((out_pad, pred_pad), lambda b, i, k: (0, 0)),
            pl.BlockSpec((1, pred_pad), lambda b, i, k: (0, 0)),
        ]
        args += [pw, pb]
        out_cols = pred_pad
    else:
        out_cols = out_pad

    kernel = functools.partial(_film_kernel, out_pad=out_pad,
                               true_out=out_size, fuse_predict=fuse_predict)

    grid = (B, n_dst_pad // tm, n_src_pad // tk)

    return pl.pallas_call(
        kernel,
        out_shape=jax.ShapeDtypeStruct((B, n_dst_pad, out_cols), jnp.float32),
        grid=grid,
        in_specs=in_specs,
        out_specs=pl.BlockSpec((None, tm, out_cols), lambda b, i, k: (b, i, 0)),
        scratch_shapes=[pltpu.VMEM((tm, out_pad), jnp.float32)],
        compiler_params=pltpu.CompilerParams(
            dimension_semantics=("parallel", "parallel", "arbitrary")),
    )(*args)


def predict_standalone(x, w, b):
    """x: (N, hidden), w: (out, hidden), b: (out,) -> sigmoid(x @ w.T + b)."""
    n, hidden = x.shape
    out_size = w.shape[0]
    n_pad = _round_up(n, 8)
    in_pad = _round_up(hidden, 128)
    out_pad = _round_up(out_size, 128)
    xp = jnp.pad(x, ((0, n_pad - n), (0, in_pad - hidden)))
    wp = _pad2(w.T, in_pad, out_pad)
    bp = _pad2(b.reshape(1, -1), 1, out_pad)
    vmem = pl.BlockSpec(memory_space=pltpu.MemorySpace.VMEM)
    out = pl.pallas_call(
        _predict_kernel,
        out_shape=jax.ShapeDtypeStruct((n_pad, out_pad), jnp.float32),
        in_specs=[vmem] * 3,
        out_specs=vmem,
    )(xp, wp, bp)
    return out[:n, :out_size]


# -----------------------------------------------------------------------------
# Parameter init (deterministic, synthetic)
# -----------------------------------------------------------------------------
def init_film_layer(key, in_size, out_size):
    k1, k2 = jax.random.split(key)
    scale_w = 1.0 / jnp.sqrt(in_size)
    return {
        "W": jax.random.uniform(k1, (out_size, in_size), jnp.float32,
                                -scale_w, scale_w),
        "film": jax.random.uniform(k2, (2 * out_size, in_size), jnp.float32,
                                   -scale_w, scale_w),
        "ln_gamma": jnp.ones((out_size,), jnp.float32),
        "ln_beta": jnp.zeros((out_size,), jnp.float32),
    }


def init_params(key, in_size, hidden_size, out_size, num_layers):
    keys = jax.random.split(key, num_layers + 1)
    film_layers = [init_film_layer(keys[0], in_size, hidden_size)]
    for i in range(1, num_layers):
        film_layers.append(init_film_layer(keys[i], hidden_size, hidden_size))
    scale_p = 1.0 / jnp.sqrt(hidden_size)
    kp1, kp2 = jax.random.split(keys[-1])
    predict_w = jax.random.uniform(kp1, (out_size, hidden_size), jnp.float32,
                                   -scale_p, scale_p)
    predict_b = jax.random.uniform(kp2, (out_size,), jnp.float32,
                                   -scale_p, scale_p)
    return {"film_layers": film_layers, "predict_w": predict_w,
            "predict_b": predict_b}


# -----------------------------------------------------------------------------
# P3_GNNFiLM forward
# -----------------------------------------------------------------------------
def p3_gnnfilm_forward(params, nfs, rank):
    """nfs: list of nodeflows; each nodeflow is
         {'features': (N0, in), 'adjs': [A_0, A_1, ...]}  with
         A_i of shape (N_{i+1}, N_i)  (dense block adjacency).
       Assumes all nodeflows share shapes (true for the synthetic data) so
       layer 0 can be batched into a single pallas_call."""
    num_layers = len(params["film_layers"])
    hidden = params["film_layers"][0]["W"].shape[0]

    # Layer 0 on every nodeflow in one batched call (parallel batch grid axis).
    feats0 = jnp.stack([nf["features"] for nf in nfs], axis=0)   # (B, N0, in)
    adjs0 = jnp.stack([nf["adjs"][0] for nf in nfs], axis=0)     # (B, N1, N0)
    n_dst0 = adjs0.shape[1]
    h0 = film_layer_batched(feats0, adjs0, params["film_layers"][0])

    # dist.all_reduce(SUM) over ranks -> identity at world_size = 1.
    # TODO(synk): multi-host all_reduce would use make_async_remote_copy ring.
    nf = nfs[rank]
    x = h0[rank, :n_dst0, :hidden]

    # Remaining FiLM layers on the rank's nodeflow; predict head fused into
    # the last layer's finalize step.
    for i in range(1, num_layers):
        layer_params = params["film_layers"][i]
        adj = nf["adjs"][i]
        is_last = (i == num_layers - 1)
        out = film_layer_batched(
            x[None], adj[None], layer_params,
            fuse_predict=is_last,
            predict_w=params["predict_w"] if is_last else None,
            predict_b=params["predict_b"] if is_last else None)
        n_dst = adj.shape[0]
        if is_last:
            x = out[0, :n_dst, :params["predict_w"].shape[0]]
        else:
            x = out[0, :n_dst, :hidden]

    if num_layers == 1:
        x = predict_standalone(x, params["predict_w"], params["predict_b"])
    return x


# -----------------------------------------------------------------------------
# Example run
# -----------------------------------------------------------------------------
if __name__ == "__main__":
    in_size, hidden_size, out_size = 32, 32, 8
    num_layers = 2            # -> nodeflow has num_layers + 1 node layers
    nodes_per_layer = 16
    num_nodeflows = 2
    rank = 0

    key = jax.random.PRNGKey(0)
    k_params, k_data = jax.random.split(key)
    params = init_params(k_params, in_size, hidden_size, out_size, num_layers)

    # Build synthetic nodeflows: random features + random 0/1 block adjacencies.
    nfs = []
    data_keys = jax.random.split(k_data, num_nodeflows)
    for dk in data_keys:
        kf, *kadj = jax.random.split(dk, num_layers + 1)
        features = jax.random.normal(kf, (nodes_per_layer, in_size), jnp.float32)
        adjs = [
            (jax.random.uniform(kadj[i], (nodes_per_layer, nodes_per_layer))
             < 0.3).astype(jnp.float32)
            for i in range(num_layers)
        ]
        nfs.append({"features": features, "adjs": adjs})

    out = p3_gnnfilm_forward(params, nfs, rank)
    out = jax.block_until_ready(out)
    assert out.shape == (nodes_per_layer, out_size)
    assert bool(jnp.all(jnp.isfinite(out)))
    assert bool(jnp.all((out >= 0.0) & (out <= 1.0)))  # sigmoid range
    print("KERNEL_OK")
</pallas_src>

<mosaic_0001>
module attributes {stable_mosaic.version = 11 : i64} {
  func.func @_film_kernel(%arg0: i32, %arg1: i32, %arg2: i32, %arg3: memref<1x128x128xf32, #tpu.memory_space<vmem>>, %arg4: memref<1x16x128xbf16, #tpu.memory_space<vmem>>, %arg5: memref<128x384xf32, #tpu.memory_space<vmem>>, %arg6: memref<1x128xf32, #tpu.memory_space<vmem>>, %arg7: memref<1x128xf32, #tpu.memory_space<vmem>>, %arg8: memref<1x16x128xf32, #tpu.memory_space<vmem>>, %arg9: memref<16x128xf32, #tpu.memory_space<vmem>>) attributes {dimension_semantics = [#tpu.dimension_semantics<parallel>, #tpu.dimension_semantics<parallel>, #tpu.dimension_semantics<arbitrary>], iteration_bounds = array<i64: 2, 1, 1>, scalar_prefetch = 0 : i64, scratch_operands = 1 : i64, tpu.core_type = #tpu.core_type<tc>, window_params = [{transform_indices = @transform_0, window_bounds = array<i64: 1, 128, 128>}, {transform_indices = @transform_1, window_bounds = array<i64: 1, 16, 128>}, {pipeline_mode = #tpu.pipeline_mode<synchronous>, transform_indices = @transform_2, window_bounds = array<i64: 128, 384>}, {pipeline_mode = #tpu.pipeline_mode<synchronous>, transform_indices = @transform_3, window_bounds = array<i64: 1, 128>}, {pipeline_mode = #tpu.pipeline_mode<synchronous>, transform_indices = @transform_4, window_bounds = array<i64: 1, 128>}, {transform_indices = @transform_5, window_bounds = array<i64: 1, 16, 128>}]} {
    %c0_i32 = arith.constant 0 : i32
    %0 = arith.cmpi eq, %arg2, %c0_i32 : i32
    %1 = arith.extui %0 : i1 to i32
    %c0_i32_0 = arith.constant 0 : i32
    %2 = arith.cmpi ne, %1, %c0_i32_0 : i32
    scf.if %2 {
      %cst_16 = arith.constant 0.000000e+00 : f32
      %24 = vector.broadcast %cst_16 : f32 to vector<16x128xf32>
      %c0_17 = arith.constant 0 : index
      %c0_18 = arith.constant 0 : index
      %25 = vector.load %arg9[%c0_17, %c0_18] : memref<16x128xf32, #tpu.memory_space<vmem>>, vector<16x128xf32>
      tpu.vector_store %arg9[%c0_17, %c0_18], %24 {strides = array<i32>} : memref<16x128xf32, #tpu.memory_space<vmem>>, vector<16x128xf32>,
    } else {
    }
    %c0 = arith.constant 0 : index
    %c0_1 = arith.constant 0 : index
    %c0_2 = arith.constant 0 : index
    %3 = vector.load %arg3[%c0, %c0_1, %c0_2] : memref<1x128x128xf32, #tpu.memory_space<vmem>>, vector<1x128x128xf32>
    %4 = vector.shape_cast %3 : vector<1x128x128xf32> to vector<128x128xf32>
    %c0_3 = arith.constant 0 : index
    %c0_4 = arith.constant 0 : index
    %5 = vector.load %arg5[%c0_3, %c0_4] : memref<128x384xf32, #tpu.memory_space<vmem>>, vector<128x384xf32>
    %cst = arith.constant dense<0.000000e+00> : vector<128x384xf32>
    %6 = tpu.matmul %4, %5, %cst {dimension_numbers = #tpu.dot_dimension_numbers<[1], [0], [0], [1], [0, 0, 1, 1], [], []>} : vector<128x128xf32>, vector<128x384xf32>, vector<128x384xf32> -> vector<128x384xf32>
    %7 = vector.extract_strided_slice %6 {offsets = [0, 0], sizes = [128, 128], strides = [1, 1]} : vector<128x384xf32> to vector<128x128xf32>
    %8 = vector.extract_strided_slice %6 {offsets = [0, 128], sizes = [128, 128], strides = [1, 1]} : vector<128x384xf32> to vector<128x128xf32>
    %9 = vector.extract_strided_slice %6 {offsets = [0, 256], sizes = [128, 128], strides = [1, 1]} : vector<128x384xf32> to vector<128x128xf32>
    %10 = arith.mulf %8, %7 : vector<128x128xf32>
    %11 = arith.addf %10, %9 : vector<128x128xf32>
    %cst_5 = arith.constant 0.000000e+00 : f32
    %12 = vector.broadcast %cst_5 : f32 to vector<128x128xf32>
    %13 = arith.maximumf %11, %12 : vector<128x128xf32>
    %c0_6 = arith.constant 0 : index
    %c0_7 = arith.constant 0 : index
    %14 = vector.load %arg9[%c0_6, %c0_7] : memref<16x128xf32, #tpu.memory_space<vmem>>, vector<16x128xf32>
    %c0_8 = arith.constant 0 : index
    %c0_9 = arith.constant 0 : index
    %c0_10 = arith.constant 0 : index
    %15 = vector.load %arg4[%c0_8, %c0_9, %c0_10] : memref<1x16x128xbf16, #tpu.memory_space<vmem>>, vector<1x16x128xbf16>
    %16 = vector.shape_cast %15 : vector<1x16x128xbf16> to vector<16x128xbf16>
    %17 = arith.truncf %13 : vector<128x128xf32> to vector<128x128xbf16>
    %cst_11 = arith.constant dense<0.000000e+00> : vector<16x128xf32>
    %18 = tpu.matmul %16, %17, %cst_11 {dimension_numbers = #tpu.dot_dimension_numbers<[1], [0], [0], [1], [0, 0, 1, 1], [], []>} : vector<16x128xbf16>, vector<128x128xbf16>, vector<16x128xf32> -> vector<16x128xf32>
    %19 = arith.addf %14, %18 : vector<16x128xf32>
    %c0_12 = arith.constant 0 : index
    %c0_13 = arith.constant 0 : index
    %20 = vector.load %arg9[%c0_12, %c0_13] : memref<16x128xf32, #tpu.memory_space<vmem>>, vector<16x128xf32>
    tpu.vector_store %arg9[%c0_12, %c0_13], %19 {strides = array<i32>} : memref<16x128xf32, #tpu.memory_space<vmem>>, vector<16x128xf32>,
    %c0_i32_14 = arith.constant 0 : i32
    %21 = arith.cmpi eq, %arg2, %c0_i32_14 : i32
    %22 = arith.extui %21 : i1 to i32
    %c0_i32_15 = arith.constant 0 : i32
    %23 = arith.cmpi ne, %22, %c0_i32_15 : i32
    scf.if %23 {
      %c0_16 = arith.constant 0 : index
      %c0_17 = arith.constant 0 : index
      %24 = vector.load %arg9[%c0_16, %c0_17] : memref<16x128xf32, #tpu.memory_space<vmem>>, vector<16x128xf32>
      %cst_18 = arith.constant dense<0.000000e+00> : vector<16xf32>
      %25 = vector.multi_reduction <add>, %24, %cst_18 [1] : vector<16x128xf32> to vector<16xf32>
      %26 = vector.shape_cast %25 : vector<16xf32> to vector<16x1xf32>
      %cst_19 = arith.constant 3.125000e-02 : f32
      %27 = vector.broadcast %cst_19 : f32 to vector<16x1xf32>
      %28 = arith.mulf %26, %27 : vector<16x1xf32>
      %29 = arith.mulf %24, %24 : vector<16x128xf32>
      %cst_20 = arith.constant dense<0.000000e+00> : vector<16xf32>
      %30 = vector.multi_reduction <add>, %29, %cst_20 [1] : vector<16x128xf32> to vector<16xf32>
      %31 = vector.shape_cast %30 : vector<16xf32> to vector<16x1xf32>
      %cst_21 = arith.constant 3.125000e-02 : f32
      %32 = vector.broadcast %cst_21 : f32 to vector<16x1xf32>
      %33 = arith.mulf %31, %32 : vector<16x1xf32>
      %34 = arith.mulf %28, %28 : vector<16x1xf32>
      %35 = arith.subf %33, %34 : vector<16x1xf32>
      %cst_22 = arith.constant 0.000000e+00 : f32
      %36 = vector.broadcast %cst_22 : f32 to vector<16x1xf32>
      %37 = arith.maximumf %35, %36 : vector<16x1xf32>
      %38 = vector.broadcast %28 : vector<16x1xf32> to vector<16x128xf32>
      %39 = arith.subf %24, %38 : vector<16x128xf32>
      %cst_23 = arith.constant 9.99999974E-6 : f32
      %40 = vector.broadcast %cst_23 : f32 to vector<16x1xf32>
      %41 = arith.addf %37, %40 : vector<16x1xf32>
      %42 = math.rsqrt %41 : vector<16x1xf32>
      %43 = vector.broadcast %42 : vector<16x1xf32> to vector<16x128xf32>
      %44 = arith.mulf %39, %43 : vector<16x128xf32>
      %c0_24 = arith.constant 0 : index
      %c0_25 = arith.constant 0 : index
      %45 = vector.load %arg6[%c0_24, %c0_25] : memref<1x128xf32, #tpu.memory_space<vmem>>, vector<1x128xf32>
      %46 = vector.broadcast %45 : vector<1x128xf32> to vector<16x128xf32>
      %47 = arith.mulf %44, %46 : vector<16x128xf32>
      %c0_26 = arith.constant 0 : index
      %c0_27 = arith.constant 0 : index
      %48 = vector.load %arg7[%c0_26, %c0_27] : memref<1x128xf32, #tpu.memory_space<vmem>>, vector<1x128xf32>
      %49 = vector.broadcast %48 : vector<1x128xf32> to vector<16x128xf32>
      %50 = arith.addf %47, %49 : vector<16x128xf32>
      %c0_28 = arith.constant 0 : index
      %c0_29 = arith.constant 0 : index
      %c0_30 = arith.constant 0 : index
      %51 = vector.load %arg8[%c0_28, %c0_29, %c0_30] : memref<1x16x128xf32, #tpu.memory_space<vmem>>, vector<1x16x128xf32>
      %52 = vector.shape_cast %51 : vector<1x16x128xf32> to vector<16x128xf32>
      %53 = vector.shape_cast %50 : vector<16x128xf32> to vector<1x16x128xf32>
      tpu.vector_store %arg8[%c0_28, %c0_29, %c0_30], %53 {strides = array<i32>} : memref<1x16x128xf32, #tpu.memory_space<vmem>>, vector<1x16x128xf32>,
    } else {
    }
    return
  }
  func.func @transform_0(%arg0: i32, %arg1: i32, %arg2: i32) -> (i32, i32, i32) {
    %c0_i32 = arith.constant 0 : i32
    %c0_i32_0 = arith.constant 0 : i32
    return %arg0, %arg2, %c0_i32 : i32, i32, i32
  }
  func.func @transform_1(%arg0: i32, %arg1: i32, %arg2: i32) -> (i32, i32, i32) {
    %c0_i32 = arith.constant 0 : i32
    return %arg0, %arg1, %arg2 : i32, i32, i32
  }
  func.func @transform_2(%arg0: i32, %arg1: i32, %arg2: i32) -> (i32, i32) {
    %c0_i32 = arith.constant 0 : i32
    %c0_i32_0 = arith.constant 0 : i32
    %c0_i32_1 = arith.constant 0 : i32
    return %c0_i32, %c0_i32_0 : i32, i32
  }
  func.func @transform_3(%arg0: i32, %arg1: i32, %arg2: i32) -> (i32, i32) {
    %c0_i32 = arith.constant 0 : i32
    %c0_i32_0 = arith.constant 0 : i32
    %c0_i32_1 = arith.constant 0 : i32
    return %c0_i32, %c0_i32_0 : i32, i32
  }
  func.func @transform_4(%arg0: i32, %arg1: i32, %arg2: i32) -> (i32, i32) {
    %c0_i32 = arith.constant 0 : i32
    %c0_i32_0 = arith.constant 0 : i32
    %c0_i32_1 = arith.constant 0 : i32
    return %c0_i32, %c0_i32_0 : i32, i32
  }
  func.func @transform_5(%arg0: i32, %arg1: i32, %arg2: i32) -> (i32, i32, i32) {
    %c0_i32 = arith.constant 0 : i32
    %c0_i32_0 = arith.constant 0 : i32
    return %arg0, %arg1, %c0_i32 : i32, i32, i32
  }
}

</mosaic_0001>

<bundles_post_ra>
// kernel: tpu_custom_call.1
= control target key start
LH: loop header
LB: loop body
LE: loop exit
PB: predicated region body
PF: predicated region fallthrough
CT: control target
= control target key end

     0   :  { %s1743_s0 = inlined_call_operand.hbm [shape: f32[2,128,128], index: 0, kind: input, shape index: {}]   ;;  %s1744_s1 = inlined_call_operand.hbm [shape: bf16[2,16,128], index: 1, kind: input, shape index: {}]   ;;  %s1745_s2 = inlined_call_operand.hbm [shape: f32[128,384], index: 2, kind: input, shape index: {}]   ;;  %s1746_s3 = inlined_call_operand.vmem [shape: f32[1,128], index: 3, kind: input, shape index: {}]   ;;  %s1747_s4 = inlined_call_operand.vmem [shape: f32[1,128], index: 4, kind: input, shape index: {}]   ;;  %s1748_s5 = inlined_call_operand.hbm [shape: f32[2,16,128], index: 5, kind: output, shape index: {}]  }
   0x1   :  { %1754 = sst [smem:[#allocation19_spill]] %s1743_s0 }
   0x2   :  { %1755 = sst [smem:[#allocation20_spill]] %s1745_s2 }
   0x3   :  { %10 = vsyncpa [#allocation4], 0 }
   0x4   :  { %12 = vsyncpa [#allocation4 + $0x1], 0 }
   0x5   :  { %13 = vsyncpa [#allocation7], 0 }
   0x6   :  { %15 = vsyncpa [#allocation7 + $0x1], 0 }
   0x7   :  { %16 = vsyncpa [#allocation5], 0 }
   0x8   :  { %18 = vsyncpa [#allocation5 + $0x1], 0  ;;  %s1468_s18 = smov 0   ;;  %s1470_s19 = smov 0  }
   0x9   :  { %s1472_s20 = smov 0   ;;  %s1474_s21 = smov 0  }
   0xa   :  { %s1476_s22 = smov 0   ;;  %s1478_s23 = smov 0  }
   0xb LB: > { %1756 = sst [smem:[#allocation14_spill]] %s1410_s20  ;;  %s1499_s24 = sadd.s32 4294967295, %s1422_s23   ;;  %s1422_s23 = sphi %s1478_s23, %s24_s23   ;;  %s1418_s22 = sphi %s1476_s22, %s1780_s22   ;;  %s1414_s21 = sphi %s1474_s21, %s1779_s21   ;;  %s1410_s20 = sphi %s1472_s20, %s1775_s20   ;;  %s1406_s19 = sphi %s1470_s19, %s1778_s19   ;;  %s1402_s18 = sphi %s1468_s18, %s1777_s18  }
   0xc   : > { %1757 = sst [smem:[#allocation15_spill]] %s1422_s23  ;;  %s1016_s25 = sadd.s32 4294967294, %s1422_s23  }
   0xd   : > { %p65_p0 = scmp.ne.s32.totalorder %s1406_s19, %s1402_s18  ;;  %p66_p1 = scmp.eq.s32.totalorder %s1499_s24, 0 }
   0xe   : > { %p190_p3 = scmp.eq.s32.totalorder %s1016_s25, 1  ;;  %p1017_p5 = scmp.ge.s32.totalorder %s1422_s23, 1 }
   0xf   : > { %p1508_p4 = por %p66_p1, %p65_p0  ;;  %p197_p7 = scmp.lt.s32.totalorder %s1422_s23, 3 }
  0x10   : > { %p1513_p6 = por %p190_p3, %p65_p0  ;;  %s1424_s29 = smov [#allocation8]  }
  0x11   : > { %p1518_p8 = pnand %p1017_p5, %p197_p7  ;;  %s209_s30 = sshll.u32 %s1424_s29, 4  ;;  %s210_s30 = int_to_ptr.vmem [resolvable:$true] %s209_s30 }
  0x12   : > { %s1759_s27 = scalar_select %p1513_p6, 1, 0 }
  0x13   : > { %p1169_p9 = pneg %p1518_p8  ;;  %p1019_p10 = scmp.ge.s32.totalorder %s1422_s23, 2 }
  0x14   : > { %1760 = sst [smem:[#allocation16_spill]] %s1759_s27  ;;  %s43_s7 = sadd.s32 1, %s1418_s22 }
  0x15   : > { %p1527_p11 = pnand %p1169_p9, %p66_p1  ;;  %s1263_s8 = scalar_lea.vmem %s210_s30, 6144 }
  0x16   : > { %p1264_p13 = scmp.ne.s32.totalorder %s210_s30, %s1263_s8  ;;  %p1271_p5 = scmp.lt.s32.totalorder %s210_s30, %s210_s30 }
  0x17   : > { %p1254_p12 = pneg %p1527_p11  ;;  %p1272_p7 = scmp.lt.s32.totalorder %s1263_s8, %s1263_s8 }
  0x19   : > { %p1266_p0 = pnand %p1264_p13, %p1254_p12  ;;  %p1273_p2 = por %p1272_p7, %p1271_p5 }
  0x1b   : > { %p1267_p3 = pneg %p1266_p0 }
  0x1d   : > { %p1274_p6 = pnand %p1273_p2, %p1267_p3 }
  0x1f   : > { %1277 = shalt.err (!%p1274_p6)
}
  0x20   : > { %s1425_s9 = smov 384   ;;  %s1426_s10 = smov 24  }
  0x21   : > { %s1763_s2 = sld [smem:[#allocation20_spill]]  ;;  %p45_p2 = scmp.ge.s32.totalorder %s43_s7, 2 }
  0x22   : > { %s52_s13 = sadd.s32 1, %s1410_s20  ;;  %p59_p6 = scmp.ne.s32.totalorder %s1410_s20, %s1406_s19 }
  0x23   : > { %p60_p9 = scmp.eq.s32.totalorder %s1422_s23, 0  ;;  %s1782_s7 = smov (%p45_p2, %s43_s7), 0 }
  0x24   : > { %1764 = sst [smem:[#allocation17_spill]] %s1782_s7  ;;  %p1766_p13 = scmp.eq.s32.totalorder %s1499_s24, 1 }
  0x25   : > { %p1545_p12 = por %p60_p9, %p59_p6  ;;  %s47_s16 = ssub.s32 %s1418_s22, %s1782_s7 }
  0x26   : > { %p1551_p0 = por %p1766_p13, %p59_p6  ;;  %p50_p3 = scmp.eq.s32.totalorder %s47_s16, 0 }
  0x27   : > { %1172 = dma.hbm_to_vmem [thread:$0]  (!%p1527_p11), %s1763_s2, 6144, %s210_s30, [#allocation7], %s1425_s9, %s1425_s9, %s1426_s10  }
  0x28   : > { %p1185_p11 = scmp.lt.s32.totalorder %s1422_s23, 2  ;;  %s1559_s17 = sand.u32 1, %s1410_s20  }
  0x29   : > { %s1020_s25 = sshll.u32 %s1559_s17, 7  ;;  %s1039_s30 = sshll.u32 %s1418_s22, 11 }
  0x2a   : > { %s1563_s29 = scalar_select %p50_p3, %s1410_s20, %s52_s13  }
  0x2b   : > { %s1769_s0 = sld [smem:[#allocation19_spill]]  ;;  %s233_s10 = scalar_lea.vmem [#allocation3], %s1020_s25 }
  0x2c   : > { %1768 = sst [smem:[#allocation18_spill]] %s1563_s29  ;;  %s242_s11 = sshll.u32 %s233_s10, 4  ;;  %s243_s11 = int_to_ptr.vmem [resolvable:$true] %s242_s11 }
  0x2d   : > { %p1571_p5 = pnand %p1185_p11, %p1545_p12  ;;  %s252_s16 = sand.u32 1, %s1422_s23  }
  0x2e   : > { %s230_s2 = scalar_lea.sflag [#allocation4], %s1559_s17  ;;  %s1291_s13 = scalar_lea.vmem %s243_s11, 2048 }
  0x2f   : > { %p1280_p7 = pneg %p1571_p5  ;;  %p1292_p2 = scmp.ne.s32.totalorder %s243_s11, %s1291_s13 }
  0x30   : > { %s1427_s25 = smov [#allocation3]  }
  0x31   : > { %s241_s9 = scalar_lea.hbm %s1769_s0, %s1039_s30  ;;  %p1294_p6 = pnand %p1292_p2, %p1280_p7 }
  0x32   : > { %s1296_s30 = sshll.u32 %s1427_s25, 4  ;;  %s1297_s30 = int_to_ptr.vmem [resolvable:$false] %s1296_s30 }
  0x33   : > { %p1295_p9 = pneg %p1294_p6  ;;  %s1298_s14 = scalar_lea.vmem %s1297_s30, 4096 }
  0x34   : > { %p1299_p12 = scmp.lt.s32.totalorder %s243_s11, %s1297_s30  ;;  %p1300_p13 = scmp.lt.s32.totalorder %s1298_s14, %s1291_s13 }
  0x36   : > { %p1301_p11 = por %p1300_p13, %p1299_p12 }
  0x38   : > { %p1302_p3 = pnand %p1301_p11, %p1295_p9 }
  0x3a   : > { %1305 = shalt.err (!%p1302_p3)
}
  0x3b   : > { %s1428_s6 = smov 128   ;;  %s1429_s8 = smov 8  }
  0x3c   : > { %1176 = dma.hbm_to_vmem [thread:$0]  (!%p1571_p5), %s241_s9, 2048, %s243_s11, %s230_s2, %s1428_s6, %s1428_s6, %s1429_s8  }
  0x3d   : > { %s1023_s10 = sshll.u32 %s1559_s17, 3  ;;  %s1040_s0 = sshll.u32 %s1418_s22, 7 }
  0x3e   : > { %s265_s25 = scalar_lea.hbm %s1744_s1, %s1040_s0  ;;  %s256_s20 = scalar_lea.vmem [#allocation6], %s1023_s10 }
  0x3f   : > { %s266_s30 = sshll.u32 %s256_s20, 4  ;;  %s253_s13 = scalar_lea.sflag [#allocation7], %s252_s16  ;;  %s267_s30 = int_to_ptr.vmem [resolvable:$true] %s266_s30 }
  0x40   : > { %s1319_s14 = scalar_lea.vmem %s267_s30, 128  ;;  %s1430_s23 = smov [#allocation6]  }
  0x41   : > { %p1320_p2 = scmp.ne.s32.totalorder %s267_s30, %s1319_s14  ;;  %s1324_s27 = sshll.u32 %s1430_s23, 4  ;;  %s1325_s27 = int_to_ptr.vmem [resolvable:$false] %s1324_s27 }
  0x42   : > { %s1326_s2 = scalar_lea.vmem %s1325_s27, 256  ;;  %p1327_p12 = scmp.lt.s32.totalorder %s267_s30, %s1325_s27 }
  0x43   : > { %p1322_p6 = pnand %p1320_p2, %p1280_p7  ;;  %p1328_p13 = scmp.lt.s32.totalorder %s1326_s2, %s1319_s14 }
  0x45   : > { %p1323_p9 = pneg %p1322_p6  ;;  %p1329_p11 = por %p1328_p13, %p1327_p12 }
  0x47   : > { %p1330_p3 = pnand %p1329_p11, %p1323_p9 }
  0x49   : > { %1333 = shalt.err (!%p1330_p3)
}
  0x4a   : > { %s1431_s0 = smov 64   ;;  %s1432_s20 = smov 4  }
  0x4b   : > { %1179 = dma.hbm_to_vmem [thread:$0]  (!%p1571_p5), %s265_s25, 128, %s267_s30, %s253_s13, %s1431_s0, %s1431_s0, %s1432_s20  }
  0x4c   : > { %278 = sbr.rel (%p1518_p8) target bundleno = 793 (0x319), region = 40  ;;  %s1597_s7 = sand.u32 (!%p1518_p8), 1, %s1406_s19  }
  0x4d   : > { %s1027_s23 = sshll.u32 (!%p1518_p8), %s1597_s7, 7  ;;  %s281_s27 = scalar_lea.sflag (!%p1518_p8), [#allocation4], %s1597_s7 }
  0x4e   : > { %s1601_s17 = scalar_lea.vmem (!%p1518_p8), [#allocation3], %s1027_s23 }
  0x51   : > { %1385 = dma.done.wait (%p1508_p4), %s281_s27, 2048  }
  0x52   : > { %1387 = vsyncadd (%p1508_p4), %s281_s27, 4294965248  ;;  %s289_s28 = sand.u32 1, %s1499_s24   ;;  %s1028_s29 = sshll.u32 %s1597_s7, 3 }
  0x53   : > { %s290_s9 = scalar_lea.sflag [#allocation7], %s289_s28  ;;  %s1609_s11 = scalar_lea.vmem [#allocation6], %s1028_s29 }
  0x54   : > { %1389 = dma.done.wait (%p1508_p4), %s290_s9, 128  }
  0x55   : > { %1391 = vsyncadd (%p1508_p4), %s290_s9, 4294967168 }
  0x56   : > { %1393 = dma.done.wait (%p66_p1), [#allocation7], 6144  }
  0x57   : > { %1395 = vsyncadd (%p66_p1), [#allocation7], 4294961152  ;;  %v1433_v0 = vmov 0.0   ;;  %v401_v1 = vld [vmem:[#allocation8 + $0x170] sm:$0xff]  ;;  %v400_v2 = vld [vmem:[#allocation8 + $0x168] sm:$0xff]  ;;  %vm1434_vm0 = vmmov 0  }
  0x58   : > { %467 = vmatprep.mubr.f32.mxu0 %v1433_v0  ;;  %v398_v3 = vld [vmem:[#allocation8 + $0x158] sm:$0xff]  ;;  %403 = vmatprep.subr.mxu0 %v401_v1  ;;  %v397_v5 = vld [vmem:[#allocation8 + $0x150] sm:$0xff]  ;;  %v395_v6 = vld [vmem:[#allocation8 + $0x140] sm:$0xff]  ;;  %s1030_s12 = sshll.u32 %s1597_s7, 4  ;;  %s1041_s8 = sshll.u32 %s1414_s21, 8 }
  0x59   : > { %v402_v4 = vld [vmem:[#allocation8 + $0x178] sm:$0xff]  ;;  %404 = vmatpush1.msra.mxu0 %v400_v2  ;;  %v399_v7 = vld [vmem:[#allocation8 + $0x160] sm:$0xff]  ;;  %v396_v9 = vld [vmem:[#allocation8 + $0x148] sm:$0xff]  ;;  %s328_s10 = scalar_lea.vmem [#allocation9], %s1030_s12  ;;  %s1693_s14 = scalar_lea.hbm %s1748_s5, %s1041_s8 }
  0x5a   : > { %1083 = vmatprep.subr.mxu1 %v402_v4  ;;  %405 = vmatprep.subr.mxu0 %v398_v3  ;;  %v394_v8 = vld [vmem:[#allocation8 + $0x138] sm:$0xff]  ;;  %v392_v10 = vld [vmem:[#allocation8 + $0x128] sm:$0xff]  ;;  %v391_v11 = vld [vmem:[#allocation8 + $0x120] sm:$0xff]  ;;  %s889_s25 = sshll.u32 %s328_s10, 4  ;;  %s874_s2 = scalar_lea.sflag [#allocation5], %s1597_s7  ;;  %s1695_s25 = int_to_ptr.vmem [resolvable:$true] %s889_s25 }
  0x5b   : > { %1084 = vmatpush3.msra.mxu1 %v402_v4  ;;  %406 = vmatpush1.msra.mxu0 %v397_v5  ;;  %v393_v12 = vld [vmem:[#allocation8 + $0x130] sm:$0xff]  ;;  %v388_v14 = vld [vmem:[#allocation8 + $0x108] sm:$0xff]  ;;  %v390_v15 = vld [vmem:[#allocation8 + $0x118] sm:$0xff]  ;;  %s1334_s0 = scalar_lea.vmem %s1695_s25, 256  ;;  %s1435_s21 = smov [#allocation9]  }
  0x5c   : > { %1085 = vmatprep.subr.mxu1 %v399_v7  ;;  %407 = vmatprep.subr.mxu0 %v395_v6  ;;  %v389_v13 = vld [vmem:[#allocation8 + $0x110] sm:$0xff]  ;;  %v386_v16 = vld [vmem:[#allocation8 + $0xf8] sm:$0xff]  ;;  %v387_v18 = vld [vmem:[#allocation8 + $0x100] sm:$0xff]  ;;  %p1335_p1 = scmp.ne.s32.totalorder %s1695_s25, %s1334_s0  ;;  %s1338_s20 = sshll.u32 %s1435_s21, 4  ;;  %s1339_s20 = int_to_ptr.vmem [resolvable:$false] %s1338_s20 }
  0x5d   : > { %1086 = vmatpush3.msra.mxu1 %v399_v7  ;;  %408 = vmatpush1.msra.mxu0 %v394_v8  ;;  %v385_v17 = vld [vmem:[#allocation8 + $0xf0] sm:$0xff]  ;;  %v383_v19 = vld [vmem:[#allocation8 + $0xe0] sm:$0xff]  ;;  %v382_v20 = vld [vmem:[#allocation8 + $0xd8] sm:$0xff]  ;;  %s1340_s23 = scalar_lea.vmem %s1339_s20, 512  ;;  %p1341_p5 = scmp.lt.s32.totalorder %s1695_s25, %s1339_s20 }
  0x5e   : > { %1087 = vmatprep.subr.mxu1 %v396_v9  ;;  %409 = vmatprep.subr.mxu0 %v392_v10  ;;  %v384_v21 = vld [vmem:[#allocation8 + $0xe8] sm:$0xff]  ;;  %v379_v23 = vld [vmem:[#allocation8 + $0xc0] sm:$0xff]  ;;  %v381_v24 = vld [vmem:[#allocation8 + $0xd0] sm:$0xff]  ;;  %p1336_p4 = pnand %p1335_p1, %p1551_p0  ;;  %p1342_p7 = scmp.lt.s32.totalorder %s1340_s23, %s1334_s0 }
  0x5f   : > { %1088 = vmatpush3.msra.mxu1 %v396_v9  ;;  %410 = vmatpush1.msra.mxu0 %v391_v11  ;;  %v380_v22 = vld [vmem:[#allocation8 + $0xc8] sm:$0xff]  ;;  %v377_v25 = vld [vmem:[#allocation8 + $0xb0] sm:$0xff]  ;;  %v378_v27 = vld [vmem:[#allocation8 + $0xb8] sm:$0xff] }
  0x60   : > { %1089 = vmatprep.subr.mxu1 %v393_v12  ;;  %411 = vmatprep.subr.mxu0 %v389_v13  ;;  %v376_v26 = vld [vmem:[#allocation8 + $0xa8] sm:$0xff]  ;;  %v374_v28 = vld [vmem:[#allocation8 + $0x98] sm:$0xff]  ;;  %v373_v29 = vld [vmem:[#allocation8 + $0x90] sm:$0xff]  ;;  %p1337_p8 = pneg %p1336_p4  ;;  %p1343_p2 = por %p1342_p7, %p1341_p5 }
  0x61   : > { %1090 = vmatpush3.msra.mxu1 %v393_v12  ;;  %412 = vmatpush1.msra.mxu0 %v388_v14  ;;  %v375_v30 = vld [vmem:[#allocation8 + $0xa0] sm:$0xff]  ;;  %v370_v32 = vld [vmem:[#allocation8 + $0x78] sm:$0xff]  ;;  %v372_v33 = vld [vmem:[#allocation8 + $0x88] sm:$0xff] }
  0x62   : > { %1091 = vmatprep.subr.mxu1 %v390_v15  ;;  %413 = vmatprep.subr.mxu0 %v386_v16  ;;  %v371_v31 = vld [vmem:[#allocation8 + $0x80] sm:$0xff]  ;;  %v368_v34 = vld [vmem:[#allocation8 + $0x68] sm:$0xff]  ;;  %v369_v36 = vld [vmem:[#allocation8 + $0x70] sm:$0xff]  ;;  %p1344_p6 = pnand %p1343_p2, %p1337_p8 }
  0x63   : > { %1092 = vmatpush3.msra.mxu1 %v390_v15  ;;  %414 = vmatpush1.msra.mxu0 %v385_v17  ;;  %v367_v35 = vld [vmem:[#allocation8 + $0x60] sm:$0xff]  ;;  %v365_v37 = vld [vmem:[#allocation8 + $0x50] sm:$0xff]  ;;  %v364_v38 = vld [vmem:[#allocation8 + $0x48] sm:$0xff] }
  0x64   : > { %1093 = vmatprep.subr.mxu1 %v387_v18  ;;  %415 = vmatprep.subr.mxu0 %v383_v19  ;;  %v366_v39 = vld [vmem:[#allocation8 + $0x58] sm:$0xff]  ;;  %v361_v41 = vld [vmem:[#allocation8 + $0x30] sm:$0xff]  ;;  %v363_v42 = vld [vmem:[#allocation8 + $0x40] sm:$0xff] }
  0x65   : > { %1094 = vmatpush3.msra.mxu1 %v387_v18  ;;  %416 = vmatpush1.msra.mxu0 %v382_v20  ;;  %v362_v40 = vld [vmem:[#allocation8 + $0x38] sm:$0xff]  ;;  %v359_v43 = vld [vmem:[#allocation8 + $0x20] sm:$0xff]  ;;  %v360_v45 = vld [vmem:[#allocation8 + $0x28] sm:$0xff] }
  0x66   : > { %1095 = vmatprep.subr.mxu1 %v384_v21  ;;  %417 = vmatprep.subr.mxu0 %v380_v22  ;;  %v358_v44 = vld [vmem:[#allocation8 + $0x18] sm:$0xff]  ;;  %v356_v46 = vld [vmem:[#allocation8 + $0x8] sm:$0xff]  ;;  %v355_v47 = vld [vmem:[#allocation8] sm:$0xff] }
  0x67   : > { %1096 = vmatpush3.msra.mxu1 %v384_v21  ;;  %418 = vmatpush1.msra.mxu0 %v379_v23  ;;  %v357_v48 = vld [vmem:[#allocation8 + $0x10] sm:$0xff]  ;;  %v340_v50 = vld [vmem:[%s1601_s17 + $0x8] sm:$0xff]  ;;  %v341_v51 = vld [vmem:[%s1601_s17 + $0x10] sm:$0xff] }
  0x68   : > { %1097 = vmatprep.subr.mxu1 %v381_v24  ;;  %419 = vmatprep.subr.mxu0 %v377_v25  ;;  %v339_v49 = vld [vmem:[%s1601_s17] sm:$0xff]  ;;  %v342_v52 = vld [vmem:[%s1601_s17 + $0x18] sm:$0xff]  ;;  %v344_v54 = vld [vmem:[%s1601_s17 + $0x28] sm:$0xff] }
  0x69   : > { %1098 = vmatpush3.msra.mxu1 %v381_v24  ;;  %420 = vmatpush1.msra.mxu0 %v376_v26  ;;  %v343_v53 = vld [vmem:[%s1601_s17 + $0x20] sm:$0xff]  ;;  %v345_v55 = vld [vmem:[%s1601_s17 + $0x30] sm:$0xff]  ;;  %v346_v56 = vld [vmem:[%s1601_s17 + $0x38] sm:$0xff] }
  0x6a   : > { %1099 = vmatprep.subr.mxu1 %v378_v27  ;;  %421 = vmatprep.subr.mxu0 %v374_v28  ;;  %v347_v57 = vld [vmem:[%s1601_s17 + $0x40] sm:$0xff]  ;;  %v348_v58 = vld [vmem:[%s1601_s17 + $0x48] sm:$0xff]  ;;  %v349_v59 = vld [vmem:[%s1601_s17 + $0x50] sm:$0xff] }
  0x6b   : > { %1100 = vmatpush3.msra.mxu1 %v378_v27  ;;  %422 = vmatpush1.msra.mxu0 %v373_v29  ;;  %v350_v60 = vld [vmem:[%s1601_s17 + $0x58] sm:$0xff]  ;;  %v351_v61 = vld [vmem:[%s1601_s17 + $0x60] sm:$0xff]  ;;  %v352_v62 = vld [vmem:[%s1601_s17 + $0x68] sm:$0xff] }
  0x6c   : > { %1101 = vmatprep.subr.mxu1 %v375_v30  ;;  %423 = vmatprep.subr.mxu0 %v371_v31  ;;  %v353_v63 = vld [vmem:[%s1601_s17 + $0x70] sm:$0xff]  ;;  %v354_v1 = vld [vmem:[%s1601_s17 + $0x78] sm:$0xff] }
  0x6d   : > { %1102 = vmatpush3.msra.mxu1 %v375_v30  ;;  %424 = vmatpush1.msra.mxu0 %v370_v32 }
  0x6e   : > { %1103 = vmatprep.subr.mxu1 %v372_v33  ;;  %425 = vmatprep.subr.mxu0 %v368_v34 }
  0x6f   : > { %1104 = vmatpush3.msra.mxu1 %v372_v33  ;;  %426 = vmatpush1.msra.mxu0 %v367_v35 }
  0x70   : > { %1105 = vmatprep.subr.mxu1 %v369_v36  ;;  %427 = vmatprep.subr.mxu0 %v365_v37 }
  0x71   : > { %1106 = vmatpush3.msra.mxu1 %v369_v36  ;;  %428 = vmatpush1.msra.mxu0 %v364_v38 }
  0x72   : > { %1107 = vmatprep.subr.mxu1 %v366_v39  ;;  %429 = vmatprep.subr.mxu0 %v362_v40 }
  0x73   : > { %1108 = vmatpush3.msra.mxu1 %v366_v39  ;;  %430 = vmatpush1.msra.mxu0 %v361_v41 }
  0x74   : > { %1109 = vmatprep.subr.mxu1 %v363_v42  ;;  %431 = vmatprep.subr.mxu0 %v359_v43 }
  0x75   : > { %1110 = vmatpush3.msra.mxu1 %v363_v42  ;;  %432 = vmatpush1.msra.mxu0 %v358_v44 }
  0x76   : > { %1111 = vmatprep.subr.mxu1 %v360_v45  ;;  %433 = vmatprep.subr.mxu0 %v356_v46 }
  0x77   : > { %1112 = vmatpush3.msra.mxu1 %v360_v45  ;;  %434 = vmatpush1.msra.mxu0 %v355_v47 }
  0x78   : > { %1113 = vmatprep.subr.mxu1 %v357_v48  ;;  %468 = vmatmul.mubr.f32.vlgmr.msra.gmra.mxu0 %v339_v49 }
  0x79   : > { %1114 = vmatpush3.msra.mxu1 %v357_v48  ;;  %1115 = vmatprep.mubr.f32.mxu1 %v339_v49 }
  0x7a   : > { %473 = vmatprep.mubr.f32.mxu0 %v1433_v0  ;;  %1116 = vmatmul.mubr.f32.vlgmr.msra.gmra.mxu1 %v340_v50 }
  0x7b   : > { %1139 = vmatprep.subr.bf16.mxu1 %v1433_v0  ;;  %1118 = vmatprep.mubr.f32.mxu1 %v341_v51 }
  0x7c   : > { %474 = vmatmul.mubr.f32.gmra.mxu0 %v340_v50 }
  0x7d   : > { %479 = vmatprep.mubr.f32.mxu0 %v1433_v0 }
  0x7e   : > { %1119 = vmatmul.mubr.f32.gmra.mxu1 %v342_v52 }
  0x7f   : > { %1121 = vmatprep.mubr.f32.mxu1 %v343_v53 }
  0x80   : > { %480 = vmatmul.mubr.f32.gmra.mxu0 %v341_v51 }
  0x81   : > { %485 = vmatprep.mubr.f32.mxu0 %v1433_v0 }
  0x82   : > { %1122 = vmatmul.mubr.f32.gmra.mxu1 %v344_v54 }
  0x83   : > { %1124 = vmatprep.mubr.f32.mxu1 %v345_v55 }
  0x84   : > { %486 = vmatmul.mubr.f32.gmra.mxu0 %v342_v52 }
  0x85   : > { %491 = vmatprep.mubr.f32.mxu0 %v1433_v0 }
  0x86   : > { %1125 = vmatmul.mubr.f32.gmra.mxu1 %v346_v56 }
  0x87   : > { %1127 = vmatprep.mubr.f32.mxu1 %v347_v57 }
  0x88   : > { %492 = vmatmul.mubr.f32.gmra.mxu0 %v343_v53 }
  0x89   : > { %497 = vmatprep.mubr.f32.mxu0 %v1433_v0 }
  0x8a   : > { %1128 = vmatmul.mubr.f32.gmra.mxu1 %v348_v58 }
  0x8b   : > { %1130 = vmatprep.mubr.f32.mxu1 %v349_v59 }
  0x8c   : > { %498 = vmatmul.mubr.f32.gmra.mxu0 %v344_v54 }
  0x8d   : > { %503 = vmatprep.mubr.f32.mxu0 %v1433_v0 }
  0x8e   : > { %1131 = vmatmul.mubr.f32.gmra.mxu1 %v350_v60 }
  0x8f   : > { %1133 = vmatprep.mubr.f32.mxu1 %v351_v61 }
  0x90   : > { %504 = vmatmul.mubr.f32.gmra.mxu0 %v345_v55 }
  0x91   : > { %509 = vmatprep.mubr.f32.mxu0 %v1433_v0 }
  0x92   : > { %1134 = vmatmul.mubr.f32.gmra.mxu1 %v352_v62 }
  0x93   : > { %1136 = vmatprep.mubr.f32.mxu1 %v353_v63 }
  0x94   : > { %510 = vmatmul.mubr.f32.gmra.mxu0 %v346_v56 }
  0x95   : > { %515 = vmatprep.mubr.f32.mxu0 %v1433_v0 }
  0x96   : > { %1137 = vmatmul.mubr.f32.gmra.mxu1 %v354_v1 }
  0x97   : > { %1155 = vmatprep.mubr.msk.bf16.mxu1 %vm1434_vm0, %v1433_v0 }
  0x98   : > { %516 = vmatmul.mubr.f32.gmra.mxu0 %v347_v57 }
  0x99   : > { %521 = vmatprep.mubr.f32.mxu0 %v1433_v0 }
  0x9c   : > { %522 = vmatmul.mubr.f32.gmra.mxu0 %v348_v58 }
  0x9d   : > { %527 = vmatprep.mubr.f32.mxu0 %v1433_v0 }
  0xa0   : > { %528 = vmatmul.mubr.f32.gmra.mxu0 %v349_v59 }
  0xa1   : > { %533 = vmatprep.mubr.f32.mxu0 %v1433_v0 }
  0xa4   : > { %534 = vmatmul.mubr.f32.gmra.mxu0 %v350_v60 }
  0xa5   : > { %539 = vmatprep.mubr.f32.mxu0 %v1433_v0 }
  0xa8   : > { %540 = vmatmul.mubr.f32.gmra.mxu0 %v351_v61 }
  0xa9   : > { %545 = vmatprep.mubr.f32.mxu0 %v1433_v0 }
  0xac   : > { %546 = vmatmul.mubr.f32.gmra.mxu0 %v352_v62 }
  0xad   : > { %551 = vmatprep.mubr.f32.mxu0 %v1433_v0 }
  0xb0   : > { %552 = vmatmul.mubr.f32.gmra.mxu0 %v353_v63 }
  0xb1   : > { %557 = vmatprep.mubr.f32.mxu0 %v1433_v0 }
  0xb4   : > { %558 = vmatmul.mubr.f32.gmra.mxu0 %v354_v1 }
 0x138   : > { %v469_v2 = vpop.f32.mrf.mxu0 }
 0x13a   : > { %v471_v3 = vpop.f32.mrf.mxu0  ;;  %v1117_v4 = vpop.f32.mrf.mxu1 }
 0x13b   : > { %v709_v5 = vmul.f32 %v471_v3, %v469_v2 }
 0x13c   : > { %v475_v6 = vpop.f32.mrf.mxu0  ;;  %v630_v7 = vpop.f32.mrf.mxu1 }
 0x13d   : > { %v725_v9 = vadd.f32 %v709_v5, %v630_v7 }
 0x13e   : > { %v477_v8 = vpop.f32.mrf.mxu0  ;;  %v1120_v12 = vpop.f32.mrf.mxu1 }
 0x13f   : > { %v710_v10 = vmul.f32 %v477_v8, %v475_v6  ;;  %v741_v15 = vmax.f32 %v725_v9, 0.0 }
 0x140   : > { %v481_v11 = vpop.f32.mrf.mxu0  ;;  %v640_v19 = vpop.f32.mrf.mxu1 }
 0x141   : > { %v726_v13 = vadd.f32 %v1117_v4, %v710_v10 }
 0x142   : > { %v483_v14 = vpop.f32.mrf.mxu0  ;;  %v1663_v34 = vpop.f32.mrf.mxu1 }
 0x143   : > { %v742_v16 = vmax.f32 %v726_v13, 0.0  ;;  %v711_v17 = vmul.f32 %v483_v14, %v481_v11 }
 0x144   : > { %v487_v18 = vpop.f32.mrf.mxu0  ;;  %v1665_v37 = vpop.f32.mrf.mxu1 }
 0x145   : > { %v1653_v20 = vpack.c.bf16 %v742_v16, %v741_v15  ;;  %v727_v22 = vadd.f32 %v711_v17, %v640_v19 }
 0x146   : > { %v489_v21 = vpop.f32.mrf.mxu0  ;;  %v1126_v39 = vpop.f32.mrf.mxu1 }
 0x147   : > { %v712_v23 = vmul.f32 %v489_v21, %v487_v18  ;;  %v743_v27 = vmax.f32 %v727_v22, 0.0 }
 0x148   : > { %v493_v24 = vpop.f32.mrf.mxu0  ;;  %v660_v42 = vpop.f32.mrf.mxu1 }
 0x149   : > { %v728_v25 = vadd.f32 %v1120_v12, %v712_v23 }
 0x14a   : > { %v495_v26 = vpop.f32.mrf.mxu0  ;;  %v1129_v44 = vpop.f32.mrf.mxu1 }
 0x14b   : > { %v744_v28 = vmax.f32 %v728_v25, 0.0  ;;  %v1655_v29 = vmul.f32 %v495_v26, %v493_v24 }
 0x14c   : > { %v1657_v30 = vpop.f32.mrf.mxu0  ;;  %v670_v47 = vpop.f32.mrf.mxu1 }
 0x14d   : > { %v1659_v31 = vpack.c.bf16 %v744_v28, %v743_v27 }
 0x14e   : > { %v1661_v32 = vpop.f32.mrf.mxu0  ;;  %v1132_v49 = vpop.f32.mrf.mxu1 }
 0x150   : > { %v505_v33 = vpop.f32.mrf.mxu0  ;;  %v680_v52 = vpop.f32.mrf.mxu1 }
 0x152   : > { %v507_v35 = vpop.f32.mrf.mxu0  ;;  %v1135_v55 = vpop.f32.mrf.mxu1 }
 0x153   : > { %v715_v26 = vmul.f32 %v507_v35, %v505_v33  ;;  %v729_v35 = vadd.f32 %v1655_v29, %v1665_v37 }
 0x154   : > { %v511_v36 = vpop.f32.mrf.mxu0  ;;  %v690_v57 = vpop.f32.mrf.mxu1 }
 0x156   : > { %v513_v38 = vpop.f32.mrf.mxu0  ;;  %v1138_v60 = vpop.f32.mrf.mxu1 }
 0x157   : > { %v716_v22 = vmul.f32 %v513_v38, %v511_v36 }
 0x158   : > { %v517_v40 = vpop.f32.mrf.mxu0  ;;  %v700_v1 = vpop.f32.mrf.mxu1 }
 0x15a   : > { %v519_v41 = vpop.f32.mrf.mxu0 }
 0x15b   : > { %v717_v18 = vmul.f32 %v519_v41, %v517_v40 }
 0x15c   : > { %v523_v43 = vpop.f32.mrf.mxu0 }
 0x15d   : > { %v733_v27 = vadd.f32 %v717_v18, %v670_v47 }
 0x15e   : > { %v525_v45 = vpop.f32.mrf.mxu0 }
 0x15f   : > { %v718_v14 = vmul.f32 %v525_v45, %v523_v43  ;;  %v714_v43 = vmul.f32 %v1661_v32, %v1657_v30  ;;  %v732_v45 = vadd.f32 %v1126_v39, %v716_v22  ;;  %v745_v39 = vmax.f32 %v729_v35, 0.0 }
 0x160   : > { %v529_v46 = vpop.f32.mrf.mxu0 }
 0x161   : > { %v734_v23 = vadd.f32 %v1129_v44, %v718_v14  ;;  %v730_v36 = vadd.f32 %v1663_v34, %v714_v43  ;;  %v748_v38 = vmax.f32 %v732_v45, 0.0  ;;  %v1247_v34 = vld [vmem:[%s1609_s11] sm:$0xff]  }
 0x162   : > { %v531_v48 = vpop.f32.mrf.mxu0 }
 0x163   : > { %v719_v10 = vmul.f32 %v531_v48, %v529_v46  ;;  %v750_v40 = vmax.f32 %v734_v23, 0.0  ;;  %v731_v46 = vadd.f32 %v715_v26, %v660_v42  ;;  %v749_v48 = vmax.f32 %v733_v27, 0.0 }
 0x164   : > { %v535_v50 = vpop.f32.mrf.mxu0  ;;  %v746_v30 = vmax.f32 %v730_v36, 0.0 }
 0x165   : > { %v735_v19 = vadd.f32 %v719_v10, %v680_v52  ;;  %v765_v33 = vpack.c.bf16 %v750_v40, %v749_v48  ;;  %v747_v44 = vmax.f32 %v731_v46, 0.0 }
 0x166   : > { %v537_v51 = vpop.f32.mrf.mxu0  ;;  %v763_v42 = vpack.c.bf16 %v746_v30, %v745_v39 }
 0x167   : > { %v720_v7 = vmul.f32 %v537_v51, %v535_v50  ;;  %v751_v28 = vmax.f32 %v735_v19, 0.0  ;;  %v764_v32 = vpack.c.bf16 %v748_v38, %v747_v44 }
 0x168   : > { %v541_v53 = vpop.f32.mrf.mxu0 }
 0x169   : > { %v736_v15 = vadd.f32 %v1132_v49, %v720_v7 }
 0x16a   : > { %v543_v54 = vpop.f32.mrf.mxu0 }
 0x16b   : > { %v721_v4 = vmul.f32 %v543_v54, %v541_v53  ;;  %v752_v24 = vmax.f32 %v736_v15, 0.0 }
 0x16c   : > { %v547_v56 = vpop.f32.mrf.mxu0 }
 0x16d   : > { %v737_v11 = vadd.f32 %v721_v4, %v690_v57  ;;  %v766_v41 = vpack.c.bf16 %v752_v24, %v751_v28  ;;  %v1032_v4 = vld [vmem:[%s1746_s3] ss:$0 sm:$0xff] }
 0x16e   : > { %v549_v58 = vpop.f32.mrf.mxu0 }
 0x16f   : > { %v722_v2 = vmul.f32 %v549_v58, %v547_v56  ;;  %v753_v21 = vmax.f32 %v737_v11, 0.0 }
 0x170   : > { %v553_v59 = vpop.f32.mrf.mxu0 }
 0x171   : > { %v738_v8 = vadd.f32 %v1135_v55, %v722_v2 }
 0x172   : > { %v555_v61 = vpop.f32.mrf.mxu0 }
 0x173   : > { %v723_v62 = vmul.f32 %v555_v61, %v553_v59  ;;  %v754_v16 = vmax.f32 %v738_v8, 0.0 }
 0x174   : > { %v559_v63 = vpop.f32.mrf.mxu0 }
 0x175   : > { %v739_v5 = vadd.f32 %v723_v62, %v700_v1  ;;  %v767_v25 = vpack.c.bf16 %v754_v16, %v753_v21 }
 0x176   : > { %v561_v3 = vpop.f32.mrf.mxu0 }
 0x177   : > { %v724_v6 = vmul.f32 %v561_v3, %v559_v63  ;;  %v755_v12 = vmax.f32 %v739_v5, 0.0 }
 0x179   : > { %v740_v9 = vadd.f32 %v1138_v60, %v724_v6  ;;  %v1033_v6 = vld [vmem:[%s1747_s4] ss:$0 sm:$0xff] }
 0x17b   : > { %v756_v13 = vmax.f32 %v740_v9, 0.0 }
 0x17d   : > { %v768_v17 = vpack.c.bf16 %v756_v13, %v755_v12 }
 0x17f   : > { %1140 = vmatpush3.bf16.msra.mxu1 %v768_v17 }
 0x180   : > { %1141 = vmatprep.subr.bf16.mxu1 %v1433_v0 }
 0x183   : > { %1142 = vmatpush3.bf16.msra.mxu1 %v767_v25 }
 0x184   : > { %1143 = vmatprep.subr.bf16.mxu1 %v1433_v0 }
 0x187   : > { %1144 = vmatpush3.bf16.msra.mxu1 %v766_v41 }
 0x188   : > { %1145 = vmatprep.subr.bf16.mxu1 %v1433_v0 }
 0x18b   : > { %1146 = vmatpush3.bf16.msra.mxu1 %v765_v33 }
 0x18c   : > { %1147 = vmatprep.subr.bf16.mxu1 %v1433_v0 }
 0x18f   : > { %1148 = vmatpush3.bf16.msra.mxu1 %v764_v32 }
 0x190   : > { %1149 = vmatprep.subr.bf16.mxu1 %v1433_v0 }
 0x193   : > { %1150 = vmatpush3.bf16.msra.mxu1 %v763_v42 }
 0x194   : > { %1151 = vmatprep.subr.bf16.mxu1 %v1433_v0 }
 0x197   : > { %1152 = vmatpush3.bf16.msra.mxu1 %v1659_v31 }
 0x198   : > { %1153 = vmatprep.subr.bf16.mxu1 %v1433_v0 }
 0x19b   : > { %1154 = vmatpush3.bf16.msra.mxu1 %v1653_v20 }
 0x19e   : > { %1156 = vmatmul.mubr.bf16.vlgmr.msra.gmra.mxu1 %v1247_v34 }
 0x25e   : > { %v809_v29 = vpop.f32.mrf.mxu1 }
 0x25f   : > { %825 = vadd.xlane.f32.xlu0 %v809_v29  ;;  %v831_v37 = vmul.f32 %v809_v29, %v809_v29 }
 0x260   : > { %v1157_v47 = vpop.f32.mrf.mxu1 }
 0x261   : > { %833 = vadd.xlane.f32.xlu1 %v831_v37 }
 0x262   : > { %v812_v49 = vpop.f32.mrf.mxu1 }
 0x263   : > { %827 = vadd.xlane.f32.xlu0 %v812_v49  ;;  %v832_v50 = vmul.f32 %v812_v49, %v812_v49 }
 0x264   : > { %v1158_v51 = vpop.f32.mrf.mxu1 }
 0x265   : > { %835 = vadd.xlane.f32.xlu1 %v832_v50 }
 0x2e8   : > { %v826_v52 = vpop.xlane.xlu0 %825 }
 0x2e9   : > { %v829_v53 = vmul.f32 0.03125, %v826_v52 }
 0x2ea   : > { %v834_v54 = vpop.xlane.xlu1 %833 }
 0x2eb   : > { %v839_v31 = vmul.f32 %v829_v53, %v829_v53  ;;  %v837_v55 = vmul.f32 0.03125, %v834_v54  ;;  %v845_v2 = vsub.f32 %v809_v29, %v829_v53 }
 0x2ec   : > { %v828_v0 = vpop.xlane.xlu0 %827 }
 0x2ed   : > { %v841_v56 = vsub.f32 %v837_v55, %v839_v31  ;;  %v830_v20 = vmul.f32 0.03125, %v828_v0 }
 0x2ee   : > { %v836_v57 = vpop.xlane.xlu1 %835 }
 0x2ef   : > { %v843_v58 = vmax.f32 %v841_v56, 0.0  ;;  %v840_v59 = vmul.f32 %v830_v20, %v830_v20  ;;  %v838_v60 = vmul.f32 0.03125, %v836_v57  ;;  %v846_v8 = vsub.f32 %v812_v49, %v830_v20 }
 0x2f1   : > { %v847_v61 = vadd.f32 1e-05, %v843_v58  ;;  %v842_v62 = vsub.f32 %v838_v60, %v840_v59 }
 0x2f3   : > { %1248 = vrsqrt.f32 %v847_v61  ;;  %v844_v63 = vmax.f32 %v842_v62, 0.0 }
 0x2f5   : > { %v848_v1 = vadd.f32 1e-05, %v844_v63 }
 0x2f7   : > { %1250 = vrsqrt.f32 %v848_v1 }
 0x300   : > { %v1249_v3 = vpop.eup %1248 }
 0x301   : > { %v851_v5 = vmul.f32 %v1249_v3, %v845_v2 }
 0x303   : > { %v860_v7 = vmul.f32 %v1032_v4, %v851_v5 }
 0x304   : > { %v1251_v9 = vpop.eup %1250 }
 0x305   : > { %v852_v10 = vmul.f32 %v1251_v9, %v846_v8  ;;  %v869_v11 = vadd.f32 %v1033_v6, %v860_v7 }
 0x307   : > { %v861_v12 = vmul.f32 %v1032_v4, %v852_v10  ;;  %871 = vst [vmem:[%s328_s10] sm:$0xff] %v869_v11 }
 0x309   : > { %v870_v13 = vadd.f32 %v1033_v6, %v861_v12 }
 0x30b   : > { %872 = vst [vmem:[%s328_s10 + $0x8] sm:$0xff] %v870_v13 }
 0x30c   : > { %1347 = shalt.err (!%p1344_p6)
}
 0x30d   : > { %s1348_s27 = scalar_lea.hbm %s1693_s14, 256  ;;  %s1352_s29 = scalar_lea.hbm %s1748_s5, 512 }
 0x30e   : > { %p1349_p9 = scmp.ne.s32.totalorder %s1693_s14, %s1348_s27  ;;  %p1353_p11 = scmp.lt.s32.totalorder %s1693_s14, %s1748_s5 }
 0x30f   : > { %p1354_p3 = scmp.lt.s32.totalorder %s1352_s29, %s1348_s27 }
 0x310   : > { %p1350_p12 = pnand %p1349_p9, %p1551_p0 }
 0x311   : > { %p1355_p1 = por %p1354_p3, %p1353_p11 }
 0x312   : > { %p1351_p13 = pneg %p1350_p12 }
 0x314   : > { %p1356_p4 = pnand %p1355_p1, %p1351_p13 }
 0x316   : > { %1359 = shalt.err (!%p1356_p4)
}
 0x317   : > { %s1436_s24 = smov 128   ;;  %s1437_s26 = smov 8  }
 0x318   : > { %1167 = dma.vmem_to_hbm [thread:$0]  (%p1551_p0), %s1695_s25, 256, %s1693_s14, %s874_s2, %s1436_s24, %s1436_s24, %s1437_s26  }
 0x319 PF: > { %s1771_s12 = sld [smem:[#allocation16_spill]]  ;;  %s904_s6 = sand.u32 1, %s1402_s18  }
 0x31a   : > { %s1772_s16 = sld [smem:[#allocation15_spill]]  ;;  %s905_s8 = scalar_lea.sflag [#allocation5], %s904_s6 }
 0x31f   : > { %p1773_p8 = scmp.ne.s32.totalorder %s1771_s12, 0 }
 0x321   : > { %p1181_p5 = pnand %p1019_p10, %p1773_p8 }
 0x323   : > { %p1182_p7 = pneg %p1181_p5 }
 0x325   : > { %1397 = dma.done.wait (%p1182_p7), %s905_s8, 256  }
 0x326   : > { %1399 = vsyncadd (%p1182_p7), %s905_s8, 4294967040  ;;  %s24_s23 = sadd.s32 1, %s1772_s16   ;;  %s1774_s10 = sld [smem:[#allocation14_spill]] }
 0x327   : > { %p21_p2 = scmp.ge.s32.totalorder %s24_s23, 4   ;;  %s1775_s20 = sld [smem:[#allocation18_spill]] }
 0x328   : > { %s1776_s15 = sld [smem:[#allocation17_spill]]  ;;  %s1777_s18 = smov %s1406_s19 }
 0x329   : > { %s1779_s21 = smov %s1418_s22 }
 0x32a   :  { %23 = sbr.rel (!%p21_p2) target bundleno = 11 (0xb), region = 110 }
 0x32c   : > { %s1778_s19 = smov %s1774_s10 }
 0x32e   : > { %s1780_s22 = smov %s1776_s15 }
 0x32f   :  { %910 = vsyncpa [#allocation4], 1 }
 0x330   :  { %912 = vsyncpa [#allocation4 + $0x1], 1 }
 0x331   :  { %913 = vsyncpa [#allocation7], 1 }
 0x332   :  { %915 = vsyncpa [#allocation7 + $0x1], 1 }
 0x333   :  { %916 = vsyncpa [#allocation5], 1 }
 0x334   :  { %918 = vsyncpa [#allocation5 + $0x1], 1 }

</bundles_post_ra>
